<compile_context>
chip_gen: v7x
topology: tpu7x:2x2x1
jax: 0.10.0
libtpu: 0.0.40
codegen_flags: <defaults>
</compile_context>

<pallas_src>
import jax
import jax.numpy as jnp
from jax import lax
from jax.experimental import pallas as pl
from jax.experimental.pallas import tpu as pltpu


# ----------------------------- kernels ------------------------------------


def _value_kernel_packed(x_ref, w_ref, b_ref, o_ref):
    # x_ref: (tile_r, 128) lane-dense packed rows (pack logical rows per row)
    # w_ref: (128, pack)   block-diagonal packed weight
    # b_ref: (1,)          float32 bias scalar in SMEM
    # o_ref: (pack, tile_r) lane-dense output block (transposed)
    #
    # acc[p, r] = sum_l w_packed[l, p] * x[r, l]  ==  state[r*pack+p] . w
    acc = lax.dot_general(
        w_ref[...], x_ref[...],
        dimension_numbers=(((0,), (1,)), ((), ())),
        preferred_element_type=jnp.float32,
    )  # (pack, tile_r), f32 accumulate on the MXU (total slack: HBM-bound)
    o_ref[...] = (acc + b_ref[0]).astype(o_ref.dtype)


def _value_kernel_rowwise(x_ref, w_ref, b_ref, o_ref):
    # x_ref: (tile_b, D)  w_ref: (1, D)  b_ref: (1,) f32 SMEM  o_ref: (tile_b, 1)
    x = x_ref[...].astype(jnp.float32)
    w = w_ref[...].astype(jnp.float32)
    prod = x * w                                   # VPU elementwise, f32
    s = jnp.sum(prod, axis=-1, keepdims=True)      # XLU lane reduce, f32
    o_ref[...] = (s + b_ref[0]).astype(o_ref.dtype)


# ----------------------------- helpers ------------------------------------


def _round_up(x, m):
    return ((x + m - 1) // m) * m


def _default_target_tile_bytes():
    """Per-input-buffer byte budget.  Double-buffered totals stay well inside
    the 32 MiB scoped-VMEM limit requested below on every generation."""
    try:
        kind = jax.devices()[0].device_kind.lower()
    except Exception:
        return 8 << 20
    if "v5 lite" in kind or "v5e" in kind or "v5lite" in kind:
        return 4 << 20   # v5e: ~0.82 TB/s HBM, 16 MiB scoped default
    return 8 << 20       # v6e / v7x: higher HBM BW -> bigger tiles pay off


def _pick_tile_rows(total_rows, vmem_bytes_per_row, row_align, target_bytes,
                    min_steps=2):
    """Rows per block: as large as the per-buffer byte budget allows, aligned
    to `row_align`; if the whole problem would fit in one block, split it so
    the grid has >= min_steps steps (megacore gets both TCs streaming)."""
    if total_rows <= row_align:
        return total_rows
    t = (target_bytes // max(vmem_bytes_per_row, 1)) // row_align * row_align
    t = max(t, row_align)
    if t >= total_rows:
        t = _round_up(-(-total_rows // min_steps), row_align)
        t = min(t, total_rows)
    return t


# ----------------------------- wrapper ------------------------------------


def value_forward(state, weight, bias, *, target_tile_bytes=None):
    """state: (B, D); weight: (1, D) (PyTorch nn.Linear layout); bias: (1,)."""
    B, D = state.shape
    dtype = state.dtype
    itemsize = jnp.dtype(dtype).itemsize
    sublane = max(8, 32 // max(itemsize, 1))       # 8 f32, 16 bf16, ...
    if target_tile_bytes is None:
        target_tile_bytes = _default_target_tile_bytes()

    w_row = weight.reshape(1, D).astype(dtype)     # tiny cast, not the activation
    b = bias.reshape(1).astype(jnp.float32)        # f32 scalar in SMEM
    vmem_limit = 32 * 1024 * 1024

    if D <= 128 and 128 % D == 0:
        # ---------------- lane-dense packed path -------------------------
        pack = 128 // D
        # Pad B up to a multiple of pack so the reshape to 128-lane rows is
        # exact; extra rows compute garbage that is sliced off below.
        B_pad = _round_up(B, pack)
        x = state if B_pad == B else jnp.pad(state, ((0, B_pad - B), (0, 0)))
        R = B_pad // pack
        x = x.reshape(R, 128)                      # free contiguous reshape
        # Block-diagonal packed weight: column p carries w over lanes
        # [p*D, (p+1)*D), so acc[p, r] == state[r*pack+p] . w
        w_packed = jnp.kron(jnp.eye(pack, dtype=dtype), w_row.reshape(D, 1))

        # tile_r is a sublane dim for the input block and a LANE dim for the
        # (pack, tile_r) output block -> align to 128 (covers every dtype).
        tile_r = _pick_tile_rows(R, 128 * itemsize, 128, target_tile_bytes)
        grid = (pl.cdiv(R, tile_r),)
        cost = pl.CostEstimate(
            flops=2 * R * 128 * pack,
            transcendentals=0,
            bytes_accessed=(R * 128 + R * pack + 128 * pack) * itemsize + 4,
        )

        out = pl.pallas_call(
            _value_kernel_packed,
            out_shape=jax.ShapeDtypeStruct((pack, R), dtype),
            grid_spec=pltpu.PrefetchScalarGridSpec(
                num_scalar_prefetch=0,
                grid=grid,
                in_specs=[
                    pl.BlockSpec((tile_r, 128), lambda i: (i, 0)),
                    pl.BlockSpec((128, pack), lambda i: (0, 0)),
                    pl.BlockSpec(memory_space=pltpu.MemorySpace.SMEM),
                ],
                out_specs=pl.BlockSpec((pack, tile_r), lambda i: (0, i)),
            ),
            compiler_params=pltpu.CompilerParams(
                dimension_semantics=("parallel",),
                vmem_limit_bytes=vmem_limit,
            ),
            cost_estimate=cost,
        )(x, w_packed, b)
        # out[p, r] is the value of (padded) batch row r*pack + p.
        return out.T.reshape(B_pad, 1)[:B]

    # ---------------- general-D fallback: VPU mul + XLU reduce ------------
    # VMEM per row: lane-padded input (round_up(D,128)) + lane-padded (.,1) out.
    vmem_per_row = (_round_up(D, 128) + 128) * itemsize
    tile_b = _pick_tile_rows(B, vmem_per_row, sublane, target_tile_bytes)
    grid = (pl.cdiv(B, tile_b),)
    cost = pl.CostEstimate(
        flops=2 * B * D,
        transcendentals=0,
        bytes_accessed=(B * D + B + D) * itemsize + 4,
    )
    return pl.pallas_call(
        _value_kernel_rowwise,
        out_shape=jax.ShapeDtypeStruct((B, 1), dtype),
        grid_spec=pltpu.PrefetchScalarGridSpec(
            num_scalar_prefetch=0,
            grid=grid,
            in_specs=[
                pl.BlockSpec((tile_b, D), lambda i: (i, 0)),
                pl.BlockSpec((1, D), lambda i: (0, 0)),
                pl.BlockSpec(memory_space=pltpu.MemorySpace.SMEM),
            ],
            out_specs=pl.BlockSpec((tile_b, 1), lambda i: (i, 0)),
        ),
        compiler_params=pltpu.CompilerParams(
            dimension_semantics=("parallel",),
            vmem_limit_bytes=vmem_limit,
        ),
        cost_estimate=cost,
    )(state, w_row, b)


# ----------------------------- self-test -----------------------------------


if __name__ == "__main__":
    key = jax.random.PRNGKey(0)
    keys = jax.random.split(key, 9)

    def make_case(kx, kw, kb, B, D):
        st = jax.random.normal(kx, (B, D), dtype=jnp.float32)
        bound = 1.0 / jnp.sqrt(jnp.float32(D))
        w = jax.random.uniform(kw, (1, D), dtype=jnp.float32,
                               minval=-bound, maxval=bound)
        bs = jax.random.uniform(kb, (1,), dtype=jnp.float32,
                                minval=-bound, maxval=bound)
        return st, w, bs

    # 1) D=32 -> lane-packed path, single block.
    s1, w1, b1 = make_case(keys[0], keys[1], keys[2], 8, 32)
    o1 = jax.block_until_ready(value_forward(s1, w1, b1))
    r1 = s1 @ w1.T + b1
    assert o1.shape == (8, 1)
    assert jnp.allclose(o1, r1, atol=1e-5, rtol=1e-5)

    # 2) D=32, B not a multiple of pack -> wrapper padding + multi-step grid
    #    (exercises the megacore split and the ragged last block).
    s2, w2, b2 = make_case(keys[3], keys[4], keys[5], 602, 32)
    o2 = jax.block_until_ready(value_forward(s2, w2, b2))
    r2 = s2 @ w2.T + b2
    assert o2.shape == (602, 1)
    assert jnp.allclose(o2, r2, atol=1e-5, rtol=1e-5)

    # 3) D that does not divide 128 -> rowwise VPU+XLU fallback (f32 accum).
    s3, w3, b3 = make_case(keys[6], keys[7], keys[8], 6, 5)
    o3 = jax.block_until_ready(value_forward(s3, w3, b3))
    r3 = s3 @ w3.T + b3
    assert o3.shape == (6, 1)
    assert jnp.allclose(o3, r3, atol=1e-5, rtol=1e-5)

    print("KERNEL_OK")
</pallas_src>

<mosaic_0001>
module attributes {stable_mosaic.version = 11 : i64} {
  func.func @_value_kernel_packed(%arg0: i32, %arg1: memref<2x128xf32, #tpu.memory_space<vmem>>, %arg2: memref<128x4xf32, #tpu.memory_space<vmem>>, %arg3: memref<1xf32, #tpu.memory_space<smem>>, %arg4: memref<4x2xf32, #tpu.memory_space<vmem>>) attributes {dimension_semantics = [#tpu.dimension_semantics<parallel>], iteration_bounds = array<i64: 1>, scalar_prefetch = 0 : i64, scratch_operands = 0 : i64, tpu.core_type = #tpu.core_type<tc>, window_params = [{transform_indices = @transform_0, window_bounds = array<i64: 2, 128>}, {pipeline_mode = #tpu.pipeline_mode<synchronous>, transform_indices = @transform_1, window_bounds = array<i64: 128, 4>}, {transform_indices = @transform_2, window_bounds = array<i64: 1>}, {transform_indices = @transform_3, window_bounds = array<i64: 4, 2>}]} {
    %c0 = arith.constant 0 : index
    %c0_0 = arith.constant 0 : index
    %0 = vector.load %arg2[%c0, %c0_0] : memref<128x4xf32, #tpu.memory_space<vmem>>, vector<128x4xf32>
    %c0_1 = arith.constant 0 : index
    %c0_2 = arith.constant 0 : index
    %1 = vector.load %arg1[%c0_1, %c0_2] : memref<2x128xf32, #tpu.memory_space<vmem>>, vector<2x128xf32>
    %cst = arith.constant dense<0.000000e+00> : vector<4x2xf32>
    %2 = tpu.matmul %0, %1, %cst {dimension_numbers = #tpu.dot_dimension_numbers<[0], [1], [1], [0], [0, 1, 1, 0], [], []>} : vector<128x4xf32>, vector<2x128xf32>, vector<4x2xf32> -> vector<4x2xf32>
    %c0_3 = arith.constant 0 : index
    %3 = memref.load %arg3[%c0_3] : memref<1xf32, #tpu.memory_space<smem>>
    %4 = vector.broadcast %3 : f32 to vector<4x2xf32>
    %5 = arith.addf %2, %4 : vector<4x2xf32>
    %c0_4 = arith.constant 0 : index
    %c0_5 = arith.constant 0 : index
    %6 = vector.load %arg4[%c0_4, %c0_5] : memref<4x2xf32, #tpu.memory_space<vmem>>, vector<4x2xf32>
    tpu.vector_store %arg4[%c0_4, %c0_5], %5 {strides = array<i32>} : memref<4x2xf32, #tpu.memory_space<vmem>>, vector<4x2xf32>,
    return
  }
  func.func @transform_0(%arg0: i32) -> (i32, i32) {
    %c0_i32 = arith.constant 0 : i32
    %c0_i32_0 = arith.constant 0 : i32
    return %arg0, %c0_i32 : i32, i32
  }
  func.func @transform_1(%arg0: i32) -> (i32, i32) {
    %c0_i32 = arith.constant 0 : i32
    %c0_i32_0 = arith.constant 0 : i32
    %c0_i32_1 = arith.constant 0 : i32
    return %c0_i32, %c0_i32_0 : i32, i32
  }
  func.func @transform_2(%arg0: i32) -> i32 {
    %c0_i32 = arith.constant 0 : i32
    %c0_i32_0 = arith.constant 0 : i32
    return %c0_i32 : i32
  }
  func.func @transform_3(%arg0: i32) -> (i32, i32) {
    %c0_i32 = arith.constant 0 : i32
    %c0_i32_0 = arith.constant 0 : i32
    return %c0_i32, %arg0 : i32, i32
  }
}

</mosaic_0001>

<bundles_post_ra>
// kernel: tpu_custom_call.1
= control target key start
LH: loop header
LB: loop body
LE: loop exit
PB: predicated region body
PF: predicated region fallthrough
CT: control target
= control target key end

     0   :  { %v151_v1 = vmov 0.0   ;;  %vm152_vm0 = vmmov 0   ;;  %vm136_vm1 = vcmask 11264   ;;  %s230_s1 = inlined_call_operand.vmem [shape: f32[128,4], index: 1, kind: input, shape index: {}]   ;;  %s231_s0 = inlined_call_operand.vmem [shape: f32[2,128], index: 0, kind: input, shape index: {}]   ;;  %s232_s2 = inlined_call_operand.<no memory space> [shape: f32[1], index: 2, kind: input, shape index: {}]   ;;  %s233_s3 = inlined_call_operand.vmem [shape: f32[4,2], index: 3, kind: output, shape index: {}]  }
   0x1   :  { %v15_v0 = vld [vmem:[%s230_s1] sm:$0xff]  ;;  %144 = vmatprep.subr.mxu0 %v151_v1  ;;  %146 = vmatprep.mubr.msk.f32.mxu0 %vm152_vm0, %v151_v1  ;;  %v16_v2 = vld [vmem:[%s230_s1 + $0x8] sm:$0xff]  ;;  %v17_v4 = vld [vmem:[%s230_s1 + $0x10] sm:$0xff]  ;;  %v33_v19 = vstv %s232_s2 }
   0x2   :  { %34 = vxpose.xlu0.b32.start [1/16] (narrow) %v15_v0, 8  ;;  %v31_v3 = vld [vmem:[%s231_s0] sm:$0x3]  ;;  %v18_v5 = vld [vmem:[%s230_s1 + $0x18] sm:$0xff]  ;;  %v20_v7 = vld [vmem:[%s230_s1 + $0x28] sm:$0xff] }
   0x3   :  { %145 = vmatpush3.xpose.msra.mxu0 %v31_v3  ;;  %v19_v6 = vld [vmem:[%s230_s1 + $0x20] sm:$0xff]  ;;  %v21_v8 = vld [vmem:[%s230_s1 + $0x30] sm:$0xff]  ;;  %v22_v9 = vld [vmem:[%s230_s1 + $0x38] sm:$0xff] }
   0x4   :  { %v23_v10 = vld [vmem:[%s230_s1 + $0x40] sm:$0xff]  ;;  %v24_v11 = vld [vmem:[%s230_s1 + $0x48] sm:$0xff]  ;;  %v25_v12 = vld [vmem:[%s230_s1 + $0x50] sm:$0xff] }
   0x5   :  { %v26_v13 = vld [vmem:[%s230_s1 + $0x58] sm:$0xff]  ;;  %v27_v14 = vld [vmem:[%s230_s1 + $0x60] sm:$0xff]  ;;  %v28_v15 = vld [vmem:[%s230_s1 + $0x68] sm:$0xff] }
   0x6   :  { %35 = vxpose.xlu0.b32.cont [2/16] (narrow) %v16_v2, 8  ;;  %v29_v16 = vld [vmem:[%s230_s1 + $0x70] sm:$0xff]  ;;  %v30_v17 = vld [vmem:[%s230_s1 + $0x78] sm:$0xff] }
   0xa   :  { %36 = vxpose.xlu0.b32.cont [3/16] (narrow) %v17_v4, 8 }
   0xe   :  { %37 = vxpose.xlu0.b32.cont [4/16] (narrow) %v18_v5, 8 }
  0x12   :  { %38 = vxpose.xlu0.b32.cont [5/16] (narrow) %v19_v6, 8 }
  0x16   :  { %39 = vxpose.xlu0.b32.cont [6/16] (narrow) %v20_v7, 8 }
  0x1a   :  { %40 = vxpose.xlu0.b32.cont [7/16] (narrow) %v21_v8, 8 }
  0x1e   :  { %41 = vxpose.xlu0.b32.cont [8/16] (narrow) %v22_v9, 8 }
  0x22   :  { %42 = vxpose.xlu0.b32.cont [9/16] (narrow) %v23_v10, 8 }
  0x26   :  { %43 = vxpose.xlu0.b32.cont [10/16] (narrow) %v24_v11, 8 }
  0x2a   :  { %44 = vxpose.xlu0.b32.cont [11/16] (narrow) %v25_v12, 8 }
  0x2e   :  { %45 = vxpose.xlu0.b32.cont [12/16] (narrow) %v26_v13, 8 }
  0x32   :  { %46 = vxpose.xlu0.b32.cont [13/16] (narrow) %v27_v14, 8 }
  0x36   :  { %47 = vxpose.xlu0.b32.cont [14/16] (narrow) %v28_v15, 8 }
  0x3a   :  { %48 = vxpose.xlu0.b32.cont [15/16] (narrow) %v29_v16, 8 }
  0x3e   :  { %49 = vxpose.xlu0.b32.end [16/16] (narrow) %v30_v17, 8 }
  0x82   :  { %v50_v18 = vpop.trf.xlu0 }
  0x83   :  { %147 = vmatmul.mubr.f32.vlgmr.msra.gmra.mrb[0].mxu0 %v50_v18 }
 0x156   :  { %v132_v20 = vpop.f32.mrb[0].mxu0 }
 0x157   :  { %v133_v21 = vadd.f32 %v132_v20, %v33_v19  ;;  %v148_v22 = vpop.f32.mrb[1].mxu0 }
 0x159   :  { %137 = vst.msk [vmem:[%s233_s3] sm:$0xf] %vm136_vm1, %v133_v21 }

</bundles_post_ra>
